<compile_context>
chip_gen: v7x
topology: tpu7x:2x2x1
jax: 0.10.0
libtpu: 0.0.40
codegen_flags: <defaults>
</compile_context>

<pallas_src>
import functools

import numpy as np
import jax
import jax.numpy as jnp
from jax.experimental import pallas as pl
from jax.experimental.pallas import tpu as pltpu

_NEG = -1e30  # acts like -inf but keeps all arithmetic finite (no NaNs)


def _round_up(x, m):
    return ((x + m - 1) // m) * m


def _crf_partition_kernel(s_steps, guard,
                          emis_ref, score0_ref, exp_trans_ref, cmax_ref,
                          out_ref, score_ref):
    # emis_ref:      (S_tile, Bblk, TP)  masked emissions for global steps 1..S-1
    # score0_ref:    (Bblk, TP)          step-0 score (start transition folded in,
    #                                     padded lanes / padded batch rows = -1e30)
    # exp_trans_ref: (TP, TP)            exp(trans[p, j] - cmax[j]); padded rows/cols 0
    # cmax_ref:      (1, TP)             column max of padded transitions (pad = -1e30)
    # out_ref:       (Bblk, TP)          final forward scores (before stop transition)
    # score_ref:     (Bblk, TP)          VMEM scratch carrying the recursion over s
    s = pl.program_id(1)
    s_tile = emis_ref.shape[0]

    @pl.when(s == 0)
    def _():
        score_ref[...] = score0_ref[...]

    exp_trans = exp_trans_ref[...]
    cmax = cmax_ref[...]
    base = s * s_tile

    def step(i, carry):
        def body():
            score = score_ref[...]
            m2 = jnp.max(score, axis=1, keepdims=True)            # (Bblk, 1)
            a = jnp.exp(score - m2)                                # (Bblk, TP)
            acc = jax.lax.dot_general(                             # MXU, 3-pass f32
                a, exp_trans,
                dimension_numbers=(((1,), (0,)), ((), ())),
                precision=jax.lax.Precision.HIGHEST,
                preferred_element_type=jnp.float32)
            acc = jnp.maximum(acc, 1e-37)                          # guard log(0)
            score_ref[...] = m2 + cmax + jnp.log(acc) + emis_ref[i]

        if guard:   # only traced when the last sequence tile has padded steps
            pl.when(base + i < s_steps)(body)
        else:
            body()
        return carry

    jax.lax.fori_loop(0, s_tile, step, 0)

    @pl.when(s == pl.num_programs(1) - 1)
    def _():
        out_ref[...] = score_ref[...]


@functools.partial(jax.jit, static_argnums=(4, 5, 6, 7))
def _crf_nll_per_example(emissions, tags, mask, transitions, start_idx, stop_idx,
                         block_b, s_tile):
    """Per-example NLL (forward_score - gold_score), shape (B,)."""
    B, S, T = emissions.shape
    emissions = emissions.astype(jnp.float32)
    mask = mask.astype(jnp.float32)
    tags = tags.astype(jnp.int32)
    transitions = transitions.astype(jnp.float32)

    tp = _round_up(max(T, 1), 128)                     # lane-dense tag axis

    # ---- batch blocking: multiple of 8 sublanes; prefer >= 2 blocks (v7x 2 TCs) ----
    b8 = _round_up(max(B, 1), 8)
    if b8 <= block_b:
        bb = max(8, _round_up(-(-B // 2), 8))
    else:
        bb = max(8, _round_up(block_b, 8))
    bp = _round_up(B, bb)
    nb = bp // bb

    # ---- sequence tiling (inner "arbitrary" grid axis; score carried in scratch) ----
    s_steps = S - 1                                    # recursion steps done in-kernel
    st = max(1, min(s_tile, max(s_steps, 1)))
    ns = max(1, -(-max(s_steps, 1) // st))
    st_pad = ns * st
    guard = (s_steps == 0) or (s_steps % st != 0)      # padded time steps exist?

    # ---- wrapper-side packing (cheap XLA glue) ----
    # NOTE: for tiny tag sets the zero-pad to TP=128 inflates the emissions HBM copy;
    # acceptable here because the kernel is latency/compute bound, not HBM bound.
    emis_masked = emissions * mask[:, :, None]                           # (B, S, T)

    # step-0 score with start transitions folded in; padded lanes / rows -> -1e30
    score0 = jnp.full((bp, tp), _NEG, jnp.float32)
    score0 = score0.at[:B, :T].set(
        (emissions[:, 0, :] + transitions[:T, start_idx][None, :]) * mask[:, 0:1])

    # time-major masked emissions for global steps 1..S-1 (zero padded)
    emis_tail = jnp.zeros((st_pad, bp, tp), jnp.float32)
    if s_steps > 0:
        emis_tail = emis_tail.at[:s_steps, :B, :T].set(
            jnp.transpose(emis_masked[:, 1:, :], (1, 0, 2)))

    # transitions: exp(trans - colmax); padded rows/cols exactly 0, padded colmax -1e30
    trans_pad = jnp.full((tp, tp), _NEG, jnp.float32).at[:T, :T].set(transitions[:T, :T])
    cmax = jnp.max(trans_pad, axis=0, keepdims=True)                     # (1, TP)
    lane_valid = jnp.arange(tp) < T
    exp_trans = jnp.where(lane_valid[None, :] & lane_valid[:, None],
                          jnp.exp(trans_pad - cmax), 0.0)                # (TP, TP)

    kernel = functools.partial(_crf_partition_kernel, s_steps, guard)

    vmem_bytes = 4 * (2 * st * bb * tp      # double-buffered emissions tile
                      + 2 * bb * tp         # score0
                      + 2 * (tp * tp + tp)  # exp_trans + cmax
                      + 2 * bb * tp         # output tile
                      + bb * tp)            # scratch
    vmem_limit = min(96 * 1024 * 1024, max(32 * 1024 * 1024, (vmem_bytes * 3) // 2))

    final_scores = pl.pallas_call(
        kernel,
        out_shape=jax.ShapeDtypeStruct((bp, tp), jnp.float32),
        grid=(nb, ns),
        in_specs=[
            pl.BlockSpec((st, bb, tp), lambda b, s: (s, b, 0)),
            pl.BlockSpec((bb, tp), lambda b, s: (b, 0)),
            pl.BlockSpec((tp, tp), lambda b, s: (0, 0)),
            pl.BlockSpec((1, tp), lambda b, s: (0, 0)),
        ],
        out_specs=pl.BlockSpec((bb, tp), lambda b, s: (b, 0)),
        scratch_shapes=[pltpu.VMEM((bb, tp), jnp.float32)],
        compiler_params=pltpu.CompilerParams(
            dimension_semantics=("parallel", "arbitrary"),
            vmem_limit_bytes=int(vmem_limit),
        ),
        cost_estimate=pl.CostEstimate(
            flops=2 * bp * max(s_steps, 1) * tp * tp,
            transcendentals=2 * bp * max(s_steps, 1) * tp,
            bytes_accessed=int(4 * (emis_tail.size + score0.size + exp_trans.size
                                    + cmax.size + bp * tp)),
        ),
    )(emis_tail, score0, exp_trans, cmax)

    # ---- terminal logsumexp + gold-path score: exact f32, tiny, plain JAX ----
    fin = final_scores[:B, :T] + transitions[stop_idx, :T][None, :]
    forward_score = jax.scipy.special.logsumexp(fin, axis=1)

    ar = jnp.arange(B)
    first = tags[:, 0]
    gold = (emissions[ar, 0, first] + transitions[first, start_idx]) * mask[:, 0]
    if S > 1:
        curr = tags[:, 1:]
        prev = tags[:, :-1]
        emit = jnp.take_along_axis(emissions[:, 1:, :], curr[:, :, None], axis=2)[..., 0]
        tsel = transitions[curr, prev]
        gold = gold + jnp.sum((tsel + emit) * mask[:, 1:], axis=1)
    seq_len = jnp.sum(mask, axis=1).astype(jnp.int32)
    last_pos = jnp.where(seq_len > 0, seq_len - 1, S - 1)
    last_tags = jnp.take_along_axis(tags, last_pos[:, None], axis=1)[:, 0]
    gold = gold + transitions[stop_idx, last_tags]

    return forward_score - gold


def crf_loss(emissions, tags, mask, transitions, start_idx, stop_idx, *,
             block_b=128, s_tile=128):
    """CRF.forward: mean over batch of (partition_function - gold_path_score)."""
    nll = _crf_nll_per_example(emissions, tags, mask, transitions,
                               int(start_idx), int(stop_idx),
                               int(block_b), int(s_tile))
    return jnp.mean(nll)


# ----------------------------- reference & test harness -----------------------------

def _init_crf_transitions(key, num_tags, start_idx, stop_idx):
    """Mirror CRF._initialize_constraints from the PyTorch module."""
    n = max(num_tags + 2, stop_idx + 1)
    t = np.array(jax.random.uniform(key, (n, n), jnp.float32, -0.1, 0.1))
    c = -100.0
    t[start_idx, :] = c
    t[:, stop_idx] = c
    if num_tags > 2:
        for i in range(3, num_tags, 2):
            t[i, 0] = c
        for i in range(2, num_tags, 2):
            b_idx = i
            i_idx = i + 1 if i + 1 < num_tags else None
            if i_idx is not None:
                for j in range(3, num_tags, 2):
                    if j != i_idx:
                        t[j, b_idx] = c
                        t[j, i_idx] = c
        for i in range(3, num_tags, 2):
            t[i, start_idx] = c
        for i in range(2, num_tags, 2):
            b_idx = i
            i_idx = i + 1 if i + 1 < num_tags else None
            if i_idx is not None:
                t[i_idx, b_idx] += 2.0
                t[i_idx, i_idx] += 1.0
        t[0, start_idx] += 1.0
        for i in range(2, num_tags, 2):
            t[i, start_idx] += 1.0
        for i in range(num_tags):
            t[stop_idx, i] += 0.5
    return jnp.asarray(t, jnp.float32)


def _crf_loss_reference(emissions, tags, mask, transitions, start_idx, stop_idx):
    """Pure-JAX replica of the PyTorch CRF.forward (no Pallas)."""
    B, S, T = emissions.shape
    mask = mask.astype(jnp.float32)
    tags = tags.astype(jnp.int32)
    ar = jnp.arange(B)
    # gold path score
    score = (emissions[ar, 0, tags[:, 0]] * mask[:, 0]
             + transitions[tags[:, 0], start_idx] * mask[:, 0])
    for i in range(1, S):
        curr, prev = tags[:, i], tags[:, i - 1]
        score = score + (transitions[curr, prev] + emissions[ar, i, curr]) * mask[:, i]
    seq_len = jnp.sum(mask, axis=1).astype(jnp.int32)
    last_idx = jnp.where(seq_len > 0, seq_len - 1, S - 1)
    gold = score + transitions[stop_idx, tags[ar, last_idx]]
    # partition function
    fscore = (emissions[:, 0] + transitions[:T, start_idx][None, :]) * mask[:, 0][:, None]
    for i in range(1, S):
        z = fscore[:, :, None] + transitions[:T, :T][None, :, :]
        fscore = jax.scipy.special.logsumexp(z, axis=1) + emissions[:, i] * mask[:, i][:, None]
    fscore = fscore + transitions[stop_idx, :T][None, :]
    fwd = jax.scipy.special.logsumexp(fscore, axis=1)
    return jnp.mean(fwd - gold)


if __name__ == "__main__":
    num_tags = 5
    start_idx, stop_idx = num_tags, num_tags + 1     # module defaults
    B, S = 2, 8

    key = jax.random.PRNGKey(0)
    k_tr, k_em, k_tg = jax.random.split(key, 3)

    transitions = _init_crf_transitions(k_tr, num_tags, start_idx, stop_idx)
    emissions = jax.random.normal(k_em, (B, S, num_tags), jnp.float32)
    tags = jax.random.randint(k_tg, (B, S), 0, num_tags, jnp.int32)
    lengths = jnp.array([S, 5], jnp.int32)
    mask = (jnp.arange(S)[None, :] < lengths[:, None]).astype(jnp.float32)

    loss = jax.block_until_ready(
        crf_loss(emissions, tags, mask, transitions, start_idx, stop_idx))
    ref = jax.block_until_ready(
        _crf_loss_reference(emissions, tags, mask, transitions, start_idx, stop_idx))

    assert loss.shape == (), loss.shape
    assert bool(jnp.isfinite(loss)), loss
    # gold path is exact f32; the in-kernel matmul runs at precision=HIGHEST, so the
    # tolerance is much tighter than the previous bf16-pass version.
    assert jnp.allclose(loss, ref, atol=5e-3, rtol=1e-4), (float(loss), float(ref))
    print("KERNEL_OK")
</pallas_src>

<mosaic_0001>
module attributes {stable_mosaic.version = 11 : i64} {
  func.func @_crf_partition_kernel(%arg0: i32, %arg1: i32, %arg2: memref<7x8x128xf32, #tpu.memory_space<vmem>>, %arg3: memref<8x128xf32, #tpu.memory_space<vmem>>, %arg4: memref<128x128xf32, #tpu.memory_space<vmem>>, %arg5: memref<1x128xf32, #tpu.memory_space<vmem>>, %arg6: memref<8x128xf32, #tpu.memory_space<vmem>>, %arg7: memref<8x128xf32, #tpu.memory_space<vmem>>) attributes {dimension_semantics = [#tpu.dimension_semantics<parallel>, #tpu.dimension_semantics<arbitrary>], iteration_bounds = array<i64: 1, 1>, scalar_prefetch = 0 : i64, scratch_operands = 1 : i64, tpu.core_type = #tpu.core_type<tc>, window_params = [{transform_indices = @transform_0, window_bounds = array<i64: 7, 8, 128>}, {transform_indices = @transform_1, window_bounds = array<i64: 8, 128>}, {pipeline_mode = #tpu.pipeline_mode<synchronous>, transform_indices = @transform_2, window_bounds = array<i64: 128, 128>}, {pipeline_mode = #tpu.pipeline_mode<synchronous>, transform_indices = @transform_3, window_bounds = array<i64: 1, 128>}, {transform_indices = @transform_4, window_bounds = array<i64: 8, 128>}]} {
    %c0_i32 = arith.constant 0 : i32
    %0 = arith.cmpi eq, %arg1, %c0_i32 : i32
    %1 = arith.extui %0 : i1 to i32
    %c0_i32_0 = arith.constant 0 : i32
    %2 = arith.cmpi ne, %1, %c0_i32_0 : i32
    scf.if %2 {
      %c0_8 = arith.constant 0 : index
      %c0_9 = arith.constant 0 : index
      %9 = vector.load %arg3[%c0_8, %c0_9] : memref<8x128xf32, #tpu.memory_space<vmem>>, vector<8x128xf32>
      %c0_10 = arith.constant 0 : index
      %c0_11 = arith.constant 0 : index
      %10 = vector.load %arg7[%c0_10, %c0_11] : memref<8x128xf32, #tpu.memory_space<vmem>>, vector<8x128xf32>
      tpu.vector_store %arg7[%c0_10, %c0_11], %9 {strides = array<i32>} : memref<8x128xf32, #tpu.memory_space<vmem>>, vector<8x128xf32>,
    } else {
    }
    %c0 = arith.constant 0 : index
    %c0_1 = arith.constant 0 : index
    %3 = vector.load %arg4[%c0, %c0_1] : memref<128x128xf32, #tpu.memory_space<vmem>>, vector<128x128xf32>
    %c0_2 = arith.constant 0 : index
    %c0_3 = arith.constant 0 : index
    %4 = vector.load %arg5[%c0_2, %c0_3] : memref<1x128xf32, #tpu.memory_space<vmem>>, vector<1x128xf32>
    %c0_i32_4 = arith.constant 0 : i32
    %c7_i32 = arith.constant 7 : i32
    %5 = arith.addi %c0_i32_4, %c7_i32 : i32
    %c1_i32 = arith.constant 1 : i32
    scf.for %arg8 = %c0_i32_4 to %5 step %c1_i32  : i32 {
      %c0_8 = arith.constant 0 : index
      %c0_9 = arith.constant 0 : index
      %9 = vector.load %arg7[%c0_8, %c0_9] : memref<8x128xf32, #tpu.memory_space<vmem>>, vector<8x128xf32>
      %cst = arith.constant dense<0xFF800000> : vector<8xf32>
      %10 = vector.multi_reduction <maximumf>, %9, %cst [1] : vector<8x128xf32> to vector<8xf32>
      %11 = vector.shape_cast %10 : vector<8xf32> to vector<8x1xf32>
      %12 = vector.broadcast %11 : vector<8x1xf32> to vector<8x128xf32>
      %13 = arith.subf %9, %12 : vector<8x128xf32>
      %14 = math.exp %13 : vector<8x128xf32>
      %cst_10 = arith.constant dense<0.000000e+00> : vector<8x128xf32>
      %15 = tpu.matmul %14, %3, %cst_10 {dimension_numbers = #tpu.dot_dimension_numbers<[1], [0], [0], [1], [0, 0, 1, 1], [], []>, precision = #tpu.contract_precision<fp32>} : vector<8x128xf32>, vector<128x128xf32>, vector<8x128xf32> -> vector<8x128xf32>
      %cst_11 = arith.constant 9.99999991E-38 : f32
      %16 = vector.broadcast %cst_11 : f32 to vector<8x128xf32>
      %17 = arith.maximumf %15, %16 : vector<8x128xf32>
      %18 = vector.broadcast %11 : vector<8x1xf32> to vector<8x128xf32>
      %19 = vector.broadcast %4 : vector<1x128xf32> to vector<8x128xf32>
      %20 = arith.addf %18, %19 : vector<8x128xf32>
      %21 = math.log %17 : vector<8x128xf32>
      %22 = arith.addf %20, %21 : vector<8x128xf32>
      %23 = arith.index_cast %arg8 : i32 to index
      %c0_12 = arith.constant 0 : index
      %c0_13 = arith.constant 0 : index
      %24 = vector.load %arg2[%23, %c0_12, %c0_13] : memref<7x8x128xf32, #tpu.memory_space<vmem>>, vector<1x8x128xf32>
      %25 = vector.shape_cast %24 : vector<1x8x128xf32> to vector<8x128xf32>
      %26 = arith.addf %22, %25 : vector<8x128xf32>
      %c0_14 = arith.constant 0 : index
      %c0_15 = arith.constant 0 : index
      %27 = vector.load %arg7[%c0_14, %c0_15] : memref<8x128xf32, #tpu.memory_space<vmem>>, vector<8x128xf32>
      tpu.vector_store %arg7[%c0_14, %c0_15], %26 {strides = array<i32>} : memref<8x128xf32, #tpu.memory_space<vmem>>, vector<8x128xf32>,
    }
    %c7_i32_5 = arith.constant 7 : i32
    %c0_i32_6 = arith.constant 0 : i32
    %6 = arith.cmpi eq, %arg1, %c0_i32_6 : i32
    %7 = arith.extui %6 : i1 to i32
    %c0_i32_7 = arith.constant 0 : i32
    %8 = arith.cmpi ne, %7, %c0_i32_7 : i32
    scf.if %8 {
      %c0_8 = arith.constant 0 : index
      %c0_9 = arith.constant 0 : index
      %9 = vector.load %arg7[%c0_8, %c0_9] : memref<8x128xf32, #tpu.memory_space<vmem>>, vector<8x128xf32>
      %c0_10 = arith.constant 0 : index
      %c0_11 = arith.constant 0 : index
      %10 = vector.load %arg6[%c0_10, %c0_11] : memref<8x128xf32, #tpu.memory_space<vmem>>, vector<8x128xf32>
      tpu.vector_store %arg6[%c0_10, %c0_11], %9 {strides = array<i32>} : memref<8x128xf32, #tpu.memory_space<vmem>>, vector<8x128xf32>,
    } else {
    }
    return
  }
  func.func @transform_0(%arg0: i32, %arg1: i32) -> (i32, i32, i32) {
    %c0_i32 = arith.constant 0 : i32
    %c0_i32_0 = arith.constant 0 : i32
    return %arg1, %arg0, %c0_i32 : i32, i32, i32
  }
  func.func @transform_1(%arg0: i32, %arg1: i32) -> (i32, i32) {
    %c0_i32 = arith.constant 0 : i32
    %c0_i32_0 = arith.constant 0 : i32
    return %arg0, %c0_i32 : i32, i32
  }
  func.func @transform_2(%arg0: i32, %arg1: i32) -> (i32, i32) {
    %c0_i32 = arith.constant 0 : i32
    %c0_i32_0 = arith.constant 0 : i32
    %c0_i32_1 = arith.constant 0 : i32
    return %c0_i32, %c0_i32_0 : i32, i32
  }
  func.func @transform_3(%arg0: i32, %arg1: i32) -> (i32, i32) {
    %c0_i32 = arith.constant 0 : i32
    %c0_i32_0 = arith.constant 0 : i32
    %c0_i32_1 = arith.constant 0 : i32
    return %c0_i32, %c0_i32_0 : i32, i32
  }
  func.func @transform_4(%arg0: i32, %arg1: i32) -> (i32, i32) {
    %c0_i32 = arith.constant 0 : i32
    %c0_i32_0 = arith.constant 0 : i32
    return %arg0, %c0_i32 : i32, i32
  }
}

</mosaic_0001>

<bundles_post_ra>
// kernel: _crf_nll_per_example.1
= control target key start
LH: loop header
LB: loop body
LE: loop exit
PB: predicated region body
PF: predicated region fallthrough
CT: control target
= control target key end

     0   :  { %s1331_s24 = smov 0   ;;  %s1664_s0 = inlined_call_operand.vmem [shape: f32[7,8,128], index: 0, kind: input, shape index: {}]   ;;  %s1665_s1 = inlined_call_operand.vmem [shape: f32[8,128], index: 1, kind: input, shape index: {}]   ;;  %s1666_s2 = inlined_call_operand.vmem [shape: f32[128,128], index: 2, kind: input, shape index: {}]   ;;  %s1667_s4 = inlined_call_operand.vmem [shape: f32[8,128], index: 4, kind: output, shape index: {}]   ;;  %s1668_s3 = inlined_call_operand.vmem [shape: f32[1,128], index: 3, kind: input, shape index: {}]  }
   0x1   :  { %v21_v0 = vld [vmem:[%s1665_s1] sm:$0xff]  ;;  %v1254_v2 = vld [vmem:[%s1666_s2 + $0x8] sm:$0xff]  ;;  %v1259_v3 = vld [vmem:[%s1666_s2 + $0x10] sm:$0xff] }
   0x2   :  { %v1249_v1 = vld [vmem:[%s1666_s2] sm:$0xff]  ;;  %1681 = vst [vmem:[#allocation4_spill] sm:$0xff] %v1254_v2  ;;  %22 = vst [vmem:[#allocation2] sm:$0xff] %v21_v0  ;;  %v1264_v4 = vld [vmem:[%s1666_s2 + $0x18] sm:$0xff] }
   0x3   :  { %1680 = vst [vmem:[#allocation3_spill] sm:$0xff] %v1249_v1  ;;  %1682 = vst [vmem:[#allocation5_spill] sm:$0xff] %v1259_v3  ;;  %v1269_v5 = vld [vmem:[%s1666_s2 + $0x20] sm:$0xff]  ;;  %v1274_v6 = vld [vmem:[%s1666_s2 + $0x28] sm:$0xff] }
   0x4   :  { %1683 = vst [vmem:[#allocation6_spill] sm:$0xff] %v1264_v4  ;;  %1684 = vst [vmem:[#allocation7_spill] sm:$0xff] %v1269_v5  ;;  %v1279_v7 = vld [vmem:[%s1666_s2 + $0x30] sm:$0xff]  ;;  %v1284_v8 = vld [vmem:[%s1666_s2 + $0x38] sm:$0xff] }
   0x5   :  { %1685 = vst [vmem:[#allocation8_spill] sm:$0xff] %v1274_v6  ;;  %1686 = vst [vmem:[#allocation9_spill] sm:$0xff] %v1279_v7  ;;  %v1289_v9 = vld [vmem:[%s1666_s2 + $0x40] sm:$0xff]  ;;  %v1294_v10 = vld [vmem:[%s1666_s2 + $0x48] sm:$0xff] }
   0x6   :  { %v1299_v11 = vld [vmem:[%s1666_s2 + $0x50] sm:$0xff]  ;;  %v1304_v12 = vld [vmem:[%s1666_s2 + $0x58] sm:$0xff]  ;;  %v1309_v13 = vld [vmem:[%s1666_s2 + $0x60] sm:$0xff] }
   0x7   :  { %v1314_v14 = vld [vmem:[%s1666_s2 + $0x68] sm:$0xff]  ;;  %v1319_v15 = vld [vmem:[%s1666_s2 + $0x70] sm:$0xff]  ;;  %v1324_v16 = vld [vmem:[%s1666_s2 + $0x78] sm:$0xff] }
   0x8   :  { %v1329_v17 = vld [vmem:[%s1668_s3] ss:$0 sm:$0xff] }
   0x9 LB: > { %v1692_v2 = vld [vmem:[#allocation4_spill] sm:$0xff]  ;;  %v1336_v18 = vld [vmem:[#allocation2] sm:$0xff]  ;;  %v1669_v22 = vmov 0.0|0.0   ;;  %v74_v30 = vand.u32 4294901760, %v1284_v8  ;;  %v77_v32 = vand.u32 4294901760, %v1289_v9  ;;  %v80_v33 = vand.u32 4294901760, %v1294_v10  ;;  %s1213_s24 = sphi %s1331_s24, %s45_s24  }
   0xa   : > { %v1691_v3 = vld [vmem:[#allocation5_spill] sm:$0xff]  ;;  %v1693_v1 = vld [vmem:[#allocation3_spill] sm:$0xff]  ;;  %v56_v20 = vand.u32 4294901760, %v1692_v2  ;;  %47 = vmax.xlane.f32.xlu0 %v1336_v18  ;;  %1111 = vmatprep.subr.bf16.mxu0 %v1669_v22  ;;  %v83_v35 = vand.u32 4294901760, %v1299_v11  ;;  %v86_v36 = vand.u32 4294901760, %v1304_v12  ;;  %v89_v38 = vand.u32 4294901760, %v1309_v13 }
   0xb   : > { %v1689_v5 = vld [vmem:[#allocation7_spill] sm:$0xff]  ;;  %v1690_v4 = vld [vmem:[#allocation6_spill] sm:$0xff]  ;;  %v53_v19 = vand.u32 4294901760, %v1693_v1  ;;  %v59_v21 = vand.u32 4294901760, %v1691_v3  ;;  %1039 = vmatprep.subr.bf16.mxu1 %v1669_v22  ;;  %v1379_v34 = vpack.c.bf16 %v80_v33, %v77_v32  ;;  %v92_v39 = vand.u32 4294901760, %v1314_v14  ;;  %s726_s2 = sshll.u32 %s1213_s24, 3 }
   0xc   : > { %v1687_v7 = vld [vmem:[#allocation9_spill] sm:$0xff]  ;;  %v1688_v6 = vld [vmem:[#allocation8_spill] sm:$0xff]  ;;  %v62_v23 = vand.u32 4294901760, %v1690_v4  ;;  %v65_v26 = vand.u32 4294901760, %v1689_v5  ;;  %v1391_v37 = vpack.c.bf16 %v86_v36, %v83_v35  ;;  %v95_v41 = vand.u32 4294901760, %v1319_v15  ;;  %s705_s25 = scalar_lea.vmem %s1664_s0, %s726_s2  ;;  %s45_s24 = sadd.s32 1, %s1213_s24  }
   0xd   : > { %v1344_v24 = vpack.c.bf16 %v56_v20, %v53_v19  ;;  %v68_v27 = vand.u32 4294901760, %v1688_v6  ;;  %v71_v29 = vand.u32 4294901760, %v1687_v7  ;;  %v1403_v40 = vpack.c.bf16 %v92_v39, %v89_v38  ;;  %p42_p0 = scmp.ge.s32.totalorder %s45_s24, 7  }
   0xe   : > { %v1349_v25 = vpack.c.bf16 %v62_v23, %v59_v21  ;;  %v98_v42 = vand.u32 4294901760, %v1324_v16  ;;  %v1410_v43 = vsub.f32 %v1693_v1, %v53_v19  ;;  %v1413_v44 = vsub.f32 %v1692_v2, %v56_v20 }
   0xf   : > { %1113 = vmatpush3.bf16.msra.mxu0 %v1344_v24  ;;  %1041 = vmatpush3.bf16.msra.mxu1 %v1344_v24  ;;  %v1357_v28 = vpack.c.bf16 %v68_v27, %v65_v26  ;;  %v1367_v31 = vpack.c.bf16 %v74_v30, %v71_v29  ;;  %v1418_v45 = vsub.f32 %v1691_v3, %v59_v21  ;;  %vm1216_vm0 = vmmov 0  }
  0x10   : > { %1114 = vmatprep.subr.bf16.mxu0 %v1669_v22  ;;  %1042 = vmatprep.subr.bf16.mxu1 %v1669_v22  ;;  %v1424_v46 = vpack.c.bf16 %v98_v42, %v95_v41  ;;  %v1427_v47 = vsub.f32 %v1690_v4, %v62_v23  ;;  %v146_v48 = vand.u32 4294901760, %v1410_v43  ;;  %v153_v49 = vand.u32 4294901760, %v1413_v44 }
  0x11   : > { %v1671_v50 = vmov 0.0   ;;  %v1441_v54 = vsub.f32 %v1689_v5, %v65_v26  ;;  %v1444_v55 = vsub.f32 %v1688_v6, %v68_v27  ;;  %v160_v58 = vand.u32 4294901760, %v1418_v45 }
  0x12   : > { %966 = vmatprep.mubr.msk.f32.mxu0 %vm1216_vm0, %v1671_v50  ;;  %v1436_v51 = vpack.c.bf16 %v153_v49, %v146_v48  ;;  %v147_v52 = vsub.f32 %v1410_v43, %v146_v48  ;;  %v154_v53 = vsub.f32 %v1413_v44, %v153_v49  ;;  %861 = vmatprep.mubr.msk.f32.mxu1 %vm1216_vm0, %v1671_v50  ;;  %v167_v59 = vand.u32 4294901760, %v1427_v47 }
  0x13   : > { %1116 = vmatpush3.bf16.msra.mxu0 %v1349_v25  ;;  %1044 = vmatpush3.bf16.msra.mxu1 %v1349_v25  ;;  %v161_v62 = vsub.f32 %v1418_v45, %v160_v58  ;;  %v1458_v0 = vsub.f32 %v1687_v7, %v71_v29  ;;  %v1461_v19 = vsub.f32 %v1284_v8, %v74_v30  ;;  %v174_v23 = vand.u32 4294901760, %v1441_v54 }
  0x14   : > { %1117 = vmatprep.subr.bf16.mxu0 %v1669_v22  ;;  %1045 = vmatprep.subr.bf16.mxu1 %v1669_v22  ;;  %v148_v56 = vand.u32 4294901760, %v147_v52  ;;  %v155_v57 = vand.u32 4294901760, %v154_v53  ;;  %v1453_v61 = vpack.c.bf16 %v167_v59, %v160_v58  ;;  %v168_v63 = vsub.f32 %v1427_v47, %v167_v59 }
  0x15   : > { %v162_v20 = vand.u32 4294901760, %v161_v62  ;;  %v181_v26 = vand.u32 4294901760, %v1444_v55  ;;  %v175_v49 = vsub.f32 %v1441_v54, %v174_v23  ;;  %v1474_v29 = vsub.f32 %v1289_v9, %v77_v32 }
  0x16   : > { %v1451_v60 = vpack.c.bf16 %v155_v57, %v148_v56  ;;  %v169_v21 = vand.u32 4294901760, %v168_v63  ;;  %v1479_v30 = vsub.f32 %v1294_v10, %v80_v33  ;;  %v188_v57 = vand.u32 4294901760, %v1458_v0 }
  0x17   : > { %1119 = vmatpush3.bf16.msra.mxu0 %v1357_v28  ;;  %1047 = vmatpush3.bf16.msra.mxu1 %v1357_v28  ;;  %v1467_v48 = vpack.c.bf16 %v181_v26, %v174_v23  ;;  %v182_v52 = vsub.f32 %v1444_v55, %v181_v26  ;;  %v176_v53 = vand.u32 4294901760, %v175_v49  ;;  %v195_v58 = vand.u32 4294901760, %v1461_v19 }
  0x18   : > { %1120 = vmatprep.subr.bf16.mxu0 %v1669_v22  ;;  %1048 = vmatprep.subr.bf16.mxu1 %v1669_v22  ;;  %v1465_v27 = vpack.c.bf16 %v169_v21, %v162_v20  ;;  %v189_v63 = vsub.f32 %v1458_v0, %v188_v57  ;;  %v1492_v20 = vsub.f32 %v1299_v11, %v83_v35  ;;  %v202_v26 = vand.u32 4294901760, %v1474_v29 }
  0x19   : > { %v183_v56 = vand.u32 4294901760, %v182_v52  ;;  %v1485_v62 = vpack.c.bf16 %v195_v58, %v188_v57  ;;  %v196_v32 = vsub.f32 %v1461_v19, %v195_v58  ;;  %v1497_v33 = vsub.f32 %v1304_v12, %v86_v36 }
  0x1a   : > { %v190_v21 = vand.u32 4294901760, %v189_v63  ;;  %v209_v49 = vand.u32 4294901760, %v1479_v30  ;;  %v1510_v57 = vsub.f32 %v1309_v13, %v89_v38  ;;  %v1515_v36 = vsub.f32 %v1314_v14, %v92_v39 }
  0x1b   : > { %1122 = vmatpush3.bf16.msra.mxu0 %v1367_v31  ;;  %1050 = vmatpush3.bf16.msra.mxu1 %v1367_v31  ;;  %v1483_v59 = vpack.c.bf16 %v183_v56, %v176_v53  ;;  %v197_v23 = vand.u32 4294901760, %v196_v32  ;;  %v203_v56 = vsub.f32 %v1474_v29, %v202_v26  ;;  %v216_v32 = vand.u32 4294901760, %v1492_v20 }
  0x1c   : > { %1123 = vmatprep.subr.bf16.mxu0 %v1669_v22  ;;  %1051 = vmatprep.subr.bf16.mxu1 %v1669_v22  ;;  %v1503_v53 = vpack.c.bf16 %v209_v49, %v202_v26  ;;  %v210_v35 = vsub.f32 %v1479_v30, %v209_v49  ;;  %v1533_v39 = vsub.f32 %v1324_v16, %v98_v42 }
  0x1d   : > { %v1501_v52 = vpack.c.bf16 %v197_v23, %v190_v21  ;;  %v204_v58 = vand.u32 4294901760, %v203_v56  ;;  %v223_v21 = vand.u32 4294901760, %v1497_v33  ;;  %v217_v49 = vsub.f32 %v1492_v20, %v216_v32 }
  0x1e   : > { %v211_v63 = vand.u32 4294901760, %v210_v35  ;;  %v251_v4 = vand.u32 4294901760, %v1533_v39 }
  0x1f   : > { %1125 = vmatpush3.bf16.msra.mxu0 %v1379_v34  ;;  %1053 = vmatpush3.bf16.msra.mxu1 %v1379_v34  ;;  %v1521_v26 = vpack.c.bf16 %v223_v21, %v216_v32  ;;  %v224_v38 = vsub.f32 %v1497_v33, %v223_v21  ;;  %v218_v56 = vand.u32 4294901760, %v217_v49 }
  0x20   : > { %1126 = vmatprep.subr.bf16.mxu0 %v1669_v22  ;;  %1054 = vmatprep.subr.bf16.mxu1 %v1669_v22  ;;  %v1519_v23 = vpack.c.bf16 %v211_v63, %v204_v58  ;;  %v230_v58 = vand.u32 4294901760, %v1510_v57  ;;  %v237_v63 = vand.u32 4294901760, %v1515_v36 }
  0x21   : > { %v225_v35 = vand.u32 4294901760, %v224_v38  ;;  %v252_v38 = vsub.f32 %v1533_v39, %v251_v4 }
  0x22   : > { %v1154_v32 = vpack.c.bf16 %v237_v63, %v230_v58  ;;  %v231_v21 = vsub.f32 %v1510_v57, %v230_v58  ;;  %v238_v1 = vsub.f32 %v1515_v36, %v237_v63  ;;  %v1091_v58 = vpack.c.bf16 %v1427_v47, %v1418_v45 }
  0x23   : > { %1128 = vmatpush3.bf16.msra.mxu0 %v1391_v37  ;;  %1056 = vmatpush3.bf16.msra.mxu1 %v1391_v37  ;;  %v1079_v50 = vpack.c.bf16 %v225_v35, %v218_v56  ;;  %v253_v7 = vand.u32 4294901760, %v252_v38  ;;  %v1088_v35 = vpack.c.bf16 %v1413_v44, %v1410_v43 }
  0x24   : > { %1129 = vmatprep.subr.bf16.mxu0 %v1669_v22  ;;  %1057 = vmatprep.subr.bf16.mxu1 %v1669_v22  ;;  %v232_v2 = vand.u32 4294901760, %v231_v21 }
  0x27   : > { %1131 = vmatpush3.bf16.msra.mxu0 %v1403_v40  ;;  %1059 = vmatpush3.bf16.msra.mxu1 %v1403_v40 }
  0x28   : > { %1132 = vmatprep.subr.bf16.mxu0 %v1669_v22  ;;  %1060 = vmatprep.subr.bf16.mxu1 %v1669_v22 }
  0x2b   : > { %1134 = vmatpush3.bf16.msra.mxu0 %v1424_v46  ;;  %1062 = vmatpush3.bf16.msra.mxu1 %v1424_v46 }
  0x2c   : > { %1135 = vmatprep.subr.bf16.mxu0 %v1669_v22  ;;  %1063 = vmatprep.subr.bf16.mxu1 %v1669_v22  ;;  %v1528_v22 = vsub.f32 %v1319_v15, %v95_v41  ;;  %v239_v41 = vand.u32 4294901760, %v238_v1  ;;  %v1094_v1 = vpack.c.bf16 %v1444_v55, %v1441_v54 }
  0x2e   : > { %v244_v3 = vand.u32 4294901760, %v1528_v22  ;;  %v1082_v42 = vpack.c.bf16 %v239_v41, %v232_v2  ;;  %v1097_v2 = vpack.c.bf16 %v1461_v19, %v1458_v0 }
  0x30   : > { %v1157_v5 = vpack.c.bf16 %v251_v4, %v244_v3  ;;  %v245_v49 = vsub.f32 %v1528_v22, %v244_v3  ;;  %v1100_v3 = vpack.c.bf16 %v1479_v30, %v1474_v29  ;;  %v1695_v4 = vmov 0.0|0.0  }
  0x32   : > { %v246_v6 = vand.u32 4294901760, %v245_v49 }
  0x34   : > { %v1085_v56 = vpack.c.bf16 %v253_v7, %v246_v6  ;;  %v1694_v7 = vmov 0.0  }
  0x97   : > { %v1559_v43 = vpop.xlane.xlu0 %47 }
  0x98   : > { %v49_v44 = vsub.f32 %v1336_v18, %v1559_v43  ;;  %v700_v47 = vadd.f32 %v1329_v17, %v1559_v43 }
  0x9a   : > { %v50_v63 = vmul.f32 1.442695, %v49_v44 }
  0x9c   : > { %1203 = vpow2.f32 %v50_v63 }
  0xa6   : > { %v1204_v21 = vpop.eup %1203 }
  0xa7   : > { %v1563_v41 = vand.u32 4294901760, %v1204_v21 }
  0xa9   : > { %v1566_v49 = vsub.f32 %v1204_v21, %v1563_v41 }
  0xab   : > { %v135_v38 = vand.u32 4294901760, %v1566_v49 }
  0xad   : > { %967 = vmatmul.mubr.f32.vlgmr.msra.gmra.mrb[0].mxu0 %v135_v38  ;;  %v136_v6 = vsub.f32 %v1566_v49, %v135_v38 }
  0xae   : > { %1137 = vmatpush3.bf16.msra.mxu0 %v1436_v51  ;;  %1001 = vmatprep.mubr.msk.f32.mxu0 %vm1216_vm0, %v1694_v7 }
  0xaf   : > { %1138 = vmatprep.subr.bf16.mxu0 %v1695_v4  ;;  %v137_v18 = vand.u32 4294901760, %v136_v6 }
  0xb1   : > { %862 = vmatmul.mubr.f32.vlgmr.msra.gmra.mrb[0].mxu1 %v137_v18 }
  0xb2   : > { %1065 = vmatpush3.bf16.msra.mxu1 %v1451_v60  ;;  %1140 = vmatpush3.bf16.msra.mxu0 %v1453_v61 }
  0xb3   : > { %1066 = vmatprep.subr.bf16.mxu1 %v1695_v4  ;;  %1141 = vmatprep.subr.bf16.mxu0 %v1695_v4 }
  0xb4   : > { %896 = vmatprep.mubr.msk.f32.mxu1 %vm1216_vm0, %v1694_v7 }
  0xb6   : > { %1068 = vmatpush3.bf16.msra.mxu1 %v1465_v27  ;;  %1143 = vmatpush3.bf16.msra.mxu0 %v1467_v48 }
  0xb7   : > { %1069 = vmatprep.subr.bf16.mxu1 %v1695_v4  ;;  %1144 = vmatprep.subr.bf16.mxu0 %v1695_v4 }
  0xba   : > { %1071 = vmatpush3.bf16.msra.mxu1 %v1483_v59  ;;  %1146 = vmatpush3.bf16.msra.mxu0 %v1485_v62 }
  0xbb   : > { %1072 = vmatprep.subr.bf16.mxu1 %v1695_v4  ;;  %1147 = vmatprep.subr.bf16.mxu0 %v1695_v4 }
  0xbe   : > { %1074 = vmatpush3.bf16.msra.mxu1 %v1501_v52  ;;  %1149 = vmatpush3.bf16.msra.mxu0 %v1503_v53 }
  0xbf   : > { %1075 = vmatprep.subr.bf16.mxu1 %v1695_v4  ;;  %1150 = vmatprep.subr.bf16.mxu0 %v1695_v4 }
  0xc2   : > { %1077 = vmatpush3.bf16.msra.mxu1 %v1519_v23  ;;  %1152 = vmatpush3.bf16.msra.mxu0 %v1521_v26 }
  0xc3   : > { %1078 = vmatprep.subr.bf16.mxu1 %v1695_v4  ;;  %1153 = vmatprep.subr.bf16.mxu0 %v1695_v4 }
  0xc6   : > { %1080 = vmatpush3.bf16.msra.mxu1 %v1079_v50  ;;  %1155 = vmatpush3.bf16.msra.mxu0 %v1154_v32  ;;  %v706_v50 = vld [vmem:[%s705_s25] sm:$0xff] }
  0xc7   : > { %1081 = vmatprep.subr.bf16.mxu1 %v1695_v4  ;;  %1156 = vmatprep.subr.bf16.mxu0 %v1695_v4 }
  0xca   : > { %1083 = vmatpush3.bf16.msra.mxu1 %v1082_v42  ;;  %1158 = vmatpush3.bf16.msra.mxu0 %v1157_v5  ;;  %v1696_v5 = vpack.c.bf16 %v1497_v33, %v1492_v20 }
  0xcb   : > { %1084 = vmatprep.subr.bf16.mxu1 %v1695_v4  ;;  %1159 = vmatprep.subr.bf16.mxu0 %v1695_v4 }
  0xcd   : > { %1002 = vmatmul.mubr.f32.vlgmr.msra.gmra.mrb[0].mxu0 %v1563_v41 }
  0xce   : > { %1086 = vmatpush3.bf16.msra.mxu1 %v1085_v56  ;;  %1161 = vmatpush3.bf16.msra.mxu0 %v1344_v24  ;;  %v1697_v24 = vpack.c.bf16 %v1515_v36, %v1510_v57 }
  0xcf   : > { %1087 = vmatprep.subr.bf16.mxu1 %v1695_v4  ;;  %1162 = vmatprep.subr.bf16.mxu0 %v1695_v4 }
  0xd0   : > { %1036 = vmatprep.mubr.msk.f32.mxu0 %vm1216_vm0, %v1694_v7 }
  0xd1   : > { %897 = vmatmul.mubr.f32.vlgmr.msra.gmra.mrb[0].mxu1 %v1563_v41 }
  0xd2   : > { %1089 = vmatpush3.bf16.msra.mxu1 %v1088_v35  ;;  %1164 = vmatpush3.bf16.msra.mxu0 %v1349_v25  ;;  %v1698_v25 = vpack.c.bf16 %v1533_v39, %v1528_v22 }
  0xd3   : > { %1090 = vmatprep.subr.bf16.mxu1 %v1695_v4  ;;  %1165 = vmatprep.subr.bf16.mxu0 %v1695_v4 }
  0xd4   : > { %931 = vmatprep.mubr.msk.f32.mxu1 %vm1216_vm0, %v1694_v7 }
  0xd6   : > { %1092 = vmatpush3.bf16.msra.mxu1 %v1091_v58  ;;  %1167 = vmatpush3.bf16.msra.mxu0 %v1357_v28 }
  0xd7   : > { %1093 = vmatprep.subr.bf16.mxu1 %v1695_v4  ;;  %1168 = vmatprep.subr.bf16.mxu0 %v1695_v4 }
  0xda   : > { %1095 = vmatpush3.bf16.msra.mxu1 %v1094_v1  ;;  %1170 = vmatpush3.bf16.msra.mxu0 %v1367_v31 }
  0xdb   : > { %1096 = vmatprep.subr.bf16.mxu1 %v1695_v4  ;;  %1171 = vmatprep.subr.bf16.mxu0 %v1695_v4 }
  0xde   : > { %1098 = vmatpush3.bf16.msra.mxu1 %v1097_v2  ;;  %1173 = vmatpush3.bf16.msra.mxu0 %v1379_v34 }
  0xdf   : > { %1099 = vmatprep.subr.bf16.mxu1 %v1695_v4  ;;  %1174 = vmatprep.subr.bf16.mxu0 %v1695_v4 }
  0xe2   : > { %1101 = vmatpush3.bf16.msra.mxu1 %v1100_v3  ;;  %1176 = vmatpush3.bf16.msra.mxu0 %v1391_v37 }
  0xe3   : > { %1102 = vmatprep.subr.bf16.mxu1 %v1695_v4  ;;  %1177 = vmatprep.subr.bf16.mxu0 %v1695_v4 }
  0xe6   : > { %1104 = vmatpush3.bf16.msra.mxu1 %v1696_v5  ;;  %1179 = vmatpush3.bf16.msra.mxu0 %v1403_v40 }
  0xe7   : > { %1105 = vmatprep.subr.bf16.mxu1 %v1695_v4  ;;  %1180 = vmatprep.subr.bf16.mxu0 %v1695_v4 }
  0xea   : > { %1107 = vmatpush3.bf16.msra.mxu1 %v1697_v24  ;;  %1182 = vmatpush3.bf16.msra.mxu0 %v1424_v46 }
  0xeb   : > { %1108 = vmatprep.subr.bf16.mxu1 %v1695_v4 }
  0xed   : > { %1037 = vmatmul.mubr.f32.vlgmr.msra.gmra.mrb[0].mxu0 %v1563_v41 }
  0xee   : > { %1110 = vmatpush3.bf16.msra.mxu1 %v1698_v25 }
  0xf1   : > { %932 = vmatmul.mubr.f32.vlgmr.msra.gmra.mrb[0].mxu1 %v1566_v49 }
 0x1c0   : > { %v689_v28 = vpop.f32.mrb[0].mxu0 }
 0x1c1   : > { %v1038_v31 = vpop.f32.mrb[1].mxu0 }
 0x1c4   : > { %v394_v34 = vpop.f32.mrb[0].mxu1 }
 0x1c5   : > { %v1183_v37 = vadd.f32 %v689_v28, %v394_v34  ;;  %v933_v40 = vpop.f32.mrb[1].mxu1 }
 0x1c7   : > { %v693_v45 = vmax.f32 %v1183_v37, 1e-37 }
 0x1c9   : > { %1205 = vlog2.f32 %v693_v45 }
 0x1d3   : > { %v1206_v46 = vpop.eup %1205 }
 0x1d4   : > { %v702_v22 = vmul.f32 0.6931472, %v1206_v46  ;;  %44 = sbr.rel (!%p42_p0) target bundleno = 9 (0x9), region = 52 }
 0x1d6   : > { %v703_v51 = vadd.f32 %v702_v22, %v700_v47 }
 0x1d8   : > { %v707_v54 = vadd.f32 %v706_v50, %v703_v51 }
 0x1da   : > { %708 = vst [vmem:[#allocation2] sm:$0xff] %v707_v54 }
 0x1e1   :  { %v712_v55 = vld [vmem:[#allocation2] sm:$0xff] }
 0x1e2   :  { %713 = vst [vmem:[%s1667_s4] sm:$0xff] %v712_v55 }

</bundles_post_ra>
